<compile_context>
chip_gen: v7x
topology: tpu7x:2x2x1
jax: 0.10.0
libtpu: 0.0.40
codegen_flags: <defaults>
</compile_context>

<pallas_src>
import functools
import numpy as np
import jax
import jax.numpy as jnp
from jax import lax
from jax.experimental import pallas as pl
from jax.experimental.pallas import tpu as pltpu

# squeezed block dim (fallback to the classic `None` spelling on older jax)
_SQ = pl.Squeezed() if hasattr(pl, "Squeezed") else None


# --------------------------------------------------------------------------- #
# glue: small separable operators (no dense (HW x HpWp) matrices anywhere)
# --------------------------------------------------------------------------- #
def _pool_dims(H, W, k=5, s=2):
    return (H - k) // s + 1, (W - k) // s + 1


def _avg_window_matrix(n_out, n_in, k=5, s=2):
    """(n_out, n_in) 1-D average-pool operator: entries 1/k over each window."""
    A = np.zeros((n_out, n_in), dtype=np.float32)
    for i in range(n_out):
        A[i, i * s:i * s + k] = 1.0 / k
    return A


def _bilinear_axis_weights(out_len, in_len):
    """(out_len, in_len) 1-D bilinear weights, align_corners=True (as in the module)."""
    A = np.zeros((out_len, in_len), dtype=np.float32)
    for h in range(out_len):
        src = 0.0 if out_len == 1 else h * (in_len - 1) / (out_len - 1)
        i0 = int(np.floor(src))
        i1 = min(i0 + 1, in_len - 1)
        t = src - i0
        A[h, i0] += 1.0 - t
        A[h, i1] += t
    return A


# --------------------------------------------------------------------------- #
# kernel A: pooled / gating branch  g = sigmoid( conv1x1( avgpool5x5s2(x) ) )
# --------------------------------------------------------------------------- #
def _pool_branch_kernel(x_ref, px_ref, w1_ref, g_ref, *, Hp):
    # x_ref : (H, W, Cin)    bf16   full image, channels last
    # px_ref: (Wp, W)        f32    5-wide window weights along W (includes 1/25)
    # w1_ref: (Cin, 128)     bf16
    # g_ref : (Hp, Wp, 128)  bf16
    for p in range(Hp):                                  # static unroll (Hp is small)
        h0 = 2 * p
        xs = x_ref[h0].astype(jnp.float32)               # (W, Cin)
        for k in range(1, 5):                            # unweighted 5-row sum along H
            xs = xs + x_ref[h0 + k].astype(jnp.float32)
        xp = jnp.dot(px_ref[...], xs,
                     preferred_element_type=jnp.float32)              # (Wp, Cin)
        gl = jnp.dot(xp.astype(jnp.bfloat16), w1_ref[...],
                     preferred_element_type=jnp.float32)              # (Wp, 128)
        g_ref[p] = jax.nn.sigmoid(gl).astype(jnp.bfloat16)


# --------------------------------------------------------------------------- #
# kernel B: main path, tiled over H rows
#   feat1 = ReLU(x @ W0_scaled + bn_b) ; feat2 = bilinear_up(g)
#   outT  = WpT @ (feat1 * feat2)^T + bp      (channels-first output tile)
# --------------------------------------------------------------------------- #
def _main_kernel(x_ref, g_ref, kwy_ref, kwx_ref, w0_ref, bn_b_ref,
                 wpT_ref, bp_ref, o_ref):
    # x_ref  : (TH*W, Cin)      bf16   row tile of the input (channels last)
    # g_ref  : (Hp*Wp, 128)     bf16   pooled/gating branch (kernel A output)
    # kwy_ref: (TH*Wp, Hp*Wp)   bf16   kron(wy_tile, I_Wp): H-direction upsample
    # kwx_ref: (TH*W, TH*Wp)    bf16   kron(I_TH, wx):      W-direction upsample (const)
    # w0_ref : (Cin, 128)       bf16   BN scale already folded in
    # bn_b   : (1, 128) f32 ; wpT: (NC8, 128) bf16 ; bp: (NC8, 1) f32
    # o_ref  : (NC8, TH*W) f32  channels-first output tile (lane-dense along TH*W)
    f1 = jnp.dot(x_ref[...], w0_ref[...], preferred_element_type=jnp.float32)
    f1 = jnp.maximum(f1 + bn_b_ref[...], 0.0)                          # (TH*W, 128)

    gy = jnp.dot(kwy_ref[...], g_ref[...],
                 preferred_element_type=jnp.float32)                   # (TH*Wp, 128)
    f2 = jnp.dot(kwx_ref[...], gy.astype(jnp.bfloat16),
                 preferred_element_type=jnp.float32)                   # (TH*W, 128)

    f = (f1 * f2).astype(jnp.bfloat16)                                 # (TH*W, 128)
    # contract the feature dim of both operands -> (NC8, TH*W) transposed output
    y = lax.dot_general(wpT_ref[...], f, (((1,), (1,)), ((), ())),
                        preferred_element_type=jnp.float32)
    o_ref[...] = y + bp_ref[...]


# --------------------------------------------------------------------------- #
# wrapper
# --------------------------------------------------------------------------- #
def head_forward(x_nchw, params):
    """Pallas implementation of _Head.forward.  x_nchw: (N, Cin, H, W) float32."""
    N, Cin, H, W = x_nchw.shape
    OC = 128
    nclass = params['wp'].shape[1]
    Hp, Wp = _pool_dims(H, W)
    HW = H * W

    # row tiling over H for the main kernel; keep TH*W a multiple of 128 so the
    # transposed output stores stay lane-dense (else fall back to one tile per image)
    TH = 8 if (H % 8 == 0 and (8 * W) % 128 == 0) else H
    T = H // TH

    # channels-last views of x (same row-major HBM buffer)
    x_nhwc = jnp.transpose(x_nchw, (0, 2, 3, 1)).astype(jnp.bfloat16)   # (N,H,W,Cin)
    x_rows = x_nhwc.reshape(N, HW, Cin)                                 # (N,HW,Cin)

    # small separable constant operators
    px = jnp.asarray(_avg_window_matrix(Wp, W) / 5.0)                   # (Wp, W)  ~1/25
    wy = _bilinear_axis_weights(H, Hp)                                  # (H, Hp)
    wx = _bilinear_axis_weights(W, Wp)                                  # (W, Wp)
    kwy = jnp.asarray(np.kron(wy, np.eye(Wp, dtype=np.float32)),
                      jnp.bfloat16)                                     # (H*Wp, Hp*Wp)
    kwx = jnp.asarray(np.kron(np.eye(TH, dtype=np.float32), wx),
                      jnp.bfloat16)                                     # (TH*W, TH*Wp)

    # fold the inference-BN scale into the b0 conv weights (bias stays separate)
    w0 = (params['w0'] * params['bn_scale']).astype(jnp.bfloat16)       # (Cin, 128)
    bn_b = params['bn_bias'].astype(jnp.float32)                        # (1, 128)
    w1 = params['w1'].astype(jnp.bfloat16)

    # channels-first projection; pad the class dim only to the sublane multiple (8)
    NC8 = ((nclass + 7) // 8) * 8
    wpT = jnp.zeros((NC8, OC), jnp.bfloat16).at[:nclass, :].set(
        params['wp'].astype(jnp.bfloat16).T)                            # (NC8, 128)
    bpT = jnp.zeros((NC8, 1), jnp.float32).at[:nclass, 0].set(
        params['bp'].reshape(-1).astype(jnp.float32))                   # (NC8, 1)

    # ---- kernel A: pooled / gating branch --------------------------------- #
    pool_cost = pl.CostEstimate(
        flops=int(N * Hp * (5 * W * Cin + 2 * Wp * W * Cin + 2 * Wp * Cin * OC)),
        transcendentals=int(N * Hp * Wp * OC),
        bytes_accessed=int(x_nhwc.size * 2 + N * Hp * Wp * OC * 2
                           + w1.size * 2 + px.size * 4),
    )
    g = pl.pallas_call(
        functools.partial(_pool_branch_kernel, Hp=Hp),
        out_shape=jax.ShapeDtypeStruct((N, Hp, Wp, OC), jnp.bfloat16),
        grid=(N,),
        in_specs=[
            pl.BlockSpec((_SQ, H, W, Cin), lambda n: (n, 0, 0, 0)),     # x (full image)
            pl.BlockSpec((Wp, W), lambda n: (0, 0)),                    # pool-W weights
            pl.BlockSpec((Cin, OC), lambda n: (0, 0)),                  # w1
        ],
        out_specs=pl.BlockSpec((_SQ, Hp, Wp, OC), lambda n: (n, 0, 0, 0)),
        compiler_params=pltpu.CompilerParams(dimension_semantics=("parallel",)),
        cost_estimate=pool_cost,
    )(x_nhwc, px, w1)

    g2 = g.reshape(N, Hp * Wp, OC)     # free row-major reshape in HBM

    # ---- kernel B: main path, row-tiled over H ----------------------------- #
    main_cost = pl.CostEstimate(
        flops=int(2 * N * HW * Cin * OC            # b0 1x1 conv
                  + 2 * N * H * Wp * Hp * Wp * OC  # H-direction upsample
                  + 2 * N * HW * TH * Wp * OC      # W-direction upsample
                  + 2 * N * HW * OC * NC8),        # projection
        transcendentals=0,
        bytes_accessed=int(x_rows.size * 2 + g2.size * 2
                           + N * kwy.size * 2 + kwx.size * 2 + w0.size * 2
                           + wpT.size * 2 + N * HW * NC8 * 4),
    )
    out_pad = pl.pallas_call(
        _main_kernel,
        out_shape=jax.ShapeDtypeStruct((N, NC8, HW), jnp.float32),
        grid=(N, T),
        in_specs=[
            pl.BlockSpec((_SQ, TH * W, Cin), lambda n, t: (n, t, 0)),   # x row tile
            pl.BlockSpec((_SQ, Hp * Wp, OC), lambda n, t: (n, 0, 0)),   # g (per batch)
            pl.BlockSpec((TH * Wp, Hp * Wp), lambda n, t: (t, 0)),      # kron(wy, I_Wp)
            # the remaining operands are small constants; they could additionally be
            # single-buffered with pipeline_mode=pl.Buffered(1) on newer jax versions
            pl.BlockSpec((TH * W, TH * Wp), lambda n, t: (0, 0)),       # kron(I_TH, wx)
            pl.BlockSpec((Cin, OC), lambda n, t: (0, 0)),               # w0 (BN-scaled)
            pl.BlockSpec((1, OC), lambda n, t: (0, 0)),                 # bn bias
            pl.BlockSpec((NC8, OC), lambda n, t: (0, 0)),               # wp^T (padded)
            pl.BlockSpec((NC8, 1), lambda n, t: (0, 0)),                # bias (padded)
        ],
        out_specs=pl.BlockSpec((_SQ, NC8, TH * W), lambda n, t: (n, 0, t)),
        compiler_params=pltpu.CompilerParams(
            dimension_semantics=("parallel", "parallel")),
        cost_estimate=main_cost,
    )(x_rows, g2, kwy, kwx, w0, bn_b, wpT, bpT)

    # channels-first output: just slice the padded class rows and reshape -> NCHW
    return out_pad[:, :nclass, :].reshape(N, nclass, H, W)


# --------------------------------------------------------------------------- #
# pure-JAX f32 reference (same math) for the correctness check
# --------------------------------------------------------------------------- #
def reference_forward(x_nchw, params):
    N, Cin, H, W = x_nchw.shape
    Hp, Wp = _pool_dims(H, W)
    py = jnp.asarray(_avg_window_matrix(Hp, H))
    px = jnp.asarray(_avg_window_matrix(Wp, W))
    wy = jnp.asarray(_bilinear_axis_weights(H, Hp))
    wx = jnp.asarray(_bilinear_axis_weights(W, Wp))
    xf = jnp.transpose(x_nchw, (0, 2, 3, 1)).astype(jnp.float32)        # (N,H,W,Cin)
    f1 = jnp.maximum(jnp.einsum('nhwc,cd->nhwd', xf, params['w0'])
                     * params['bn_scale'] + params['bn_bias'], 0.0)
    xp = jnp.einsum('ph,nhwc->npwc', py, xf)
    xp = jnp.einsum('qw,npwc->npqc', px, xp)
    gg = jax.nn.sigmoid(jnp.einsum('npqc,cd->npqd', xp, params['w1']))
    f2 = jnp.einsum('hp,npqd->nhqd', wy, gg)
    f2 = jnp.einsum('wq,nhqd->nhwd', wx, f2)
    y = jnp.einsum('nhwd,dk->nhwk', f1 * f2, params['wp']) + params['bp']
    return jnp.transpose(y, (0, 3, 1, 2))


def init_params(key, in_channels, nclass):
    """Deterministic synthetic parameters matching _Head's shapes (inference BN)."""
    k = jax.random.split(key, 8)
    out_channels = 128
    eps = 1e-5
    # conv weights stored as (Cin, Cout) == torch (Cout, Cin, 1, 1) transposed
    w0 = jax.random.normal(k[0], (in_channels, out_channels), jnp.float32) * 0.1
    w1 = jax.random.normal(k[1], (in_channels, out_channels), jnp.float32) * 0.1
    gamma = 1.0 + 0.1 * jax.random.normal(k[2], (out_channels,), jnp.float32)
    beta = 0.1 * jax.random.normal(k[3], (out_channels,), jnp.float32)
    run_mean = 0.1 * jax.random.normal(k[4], (out_channels,), jnp.float32)
    run_var = 0.5 + jax.random.uniform(k[5], (out_channels,), jnp.float32)
    bn_scale = gamma / jnp.sqrt(run_var + eps)
    bn_bias = beta - run_mean * bn_scale
    wp = jax.random.normal(k[6], (out_channels, nclass), jnp.float32) * 0.1
    bp = 0.1 * jax.random.normal(k[7], (nclass,), jnp.float32)
    return {
        'w0': w0, 'w1': w1,
        'bn_scale': bn_scale.reshape(1, out_channels),
        'bn_bias': bn_bias.reshape(1, out_channels),
        'wp': wp, 'bp': bp.reshape(1, nclass),
    }


if __name__ == "__main__":
    key = jax.random.PRNGKey(0)
    kx, kp = jax.random.split(key)

    N, Cin, H, W = 2, 4, 16, 16
    nclass = 6

    x = jax.random.normal(kx, (N, Cin, H, W), jnp.float32)
    params = init_params(kp, Cin, nclass)

    out = jax.block_until_ready(head_forward(x, params))
    ref = jax.block_until_ready(reference_forward(x, params))

    assert out.shape == (N, nclass, H, W)
    # bf16 matmul operands with f32 accumulation -> loosened tolerance
    np.testing.assert_allclose(np.asarray(out), np.asarray(ref), rtol=2e-2, atol=2e-2)

    print("KERNEL_OK")
</pallas_src>

<mosaic_0001>
module attributes {stable_mosaic.version = 11 : i64} {
  func.func @_pool_branch_kernel(%arg0: i32, %arg1: memref<1x16x16x4xbf16, #tpu.memory_space<vmem>>, %arg2: memref<6x16xf32, #tpu.memory_space<vmem>>, %arg3: memref<4x128xbf16, #tpu.memory_space<vmem>>, %arg4: memref<1x6x6x128xbf16, #tpu.memory_space<vmem>>) attributes {dimension_semantics = [#tpu.dimension_semantics<parallel>], iteration_bounds = array<i64: 2>, scalar_prefetch = 0 : i64, scratch_operands = 0 : i64, tpu.core_type = #tpu.core_type<tc>, window_params = [{transform_indices = @transform_0, window_bounds = array<i64: 1, 16, 16, 4>}, {pipeline_mode = #tpu.pipeline_mode<synchronous>, transform_indices = @transform_1, window_bounds = array<i64: 6, 16>}, {pipeline_mode = #tpu.pipeline_mode<synchronous>, transform_indices = @transform_2, window_bounds = array<i64: 4, 128>}, {transform_indices = @transform_3, window_bounds = array<i64: 1, 6, 6, 128>}]} {
    %c0 = arith.constant 0 : index
    %c0_0 = arith.constant 0 : index
    %c0_1 = arith.constant 0 : index
    %c0_2 = arith.constant 0 : index
    %0 = vector.load %arg1[%c0, %c0_0, %c0_1, %c0_2] : memref<1x16x16x4xbf16, #tpu.memory_space<vmem>>, vector<1x1x16x4xbf16>
    %1 = vector.shape_cast %0 : vector<1x1x16x4xbf16> to vector<16x4xbf16>
    %2 = arith.extf %1 : vector<16x4xbf16> to vector<16x4xf32>
    %c0_3 = arith.constant 0 : index
    %c1 = arith.constant 1 : index
    %c0_4 = arith.constant 0 : index
    %c0_5 = arith.constant 0 : index
    %3 = vector.load %arg1[%c0_3, %c1, %c0_4, %c0_5] : memref<1x16x16x4xbf16, #tpu.memory_space<vmem>>, vector<1x1x16x4xbf16>
    %4 = vector.shape_cast %3 : vector<1x1x16x4xbf16> to vector<16x4xbf16>
    %5 = arith.extf %4 : vector<16x4xbf16> to vector<16x4xf32>
    %6 = arith.addf %2, %5 : vector<16x4xf32>
    %c0_6 = arith.constant 0 : index
    %c2 = arith.constant 2 : index
    %c0_7 = arith.constant 0 : index
    %c0_8 = arith.constant 0 : index
    %7 = vector.load %arg1[%c0_6, %c2, %c0_7, %c0_8] : memref<1x16x16x4xbf16, #tpu.memory_space<vmem>>, vector<1x1x16x4xbf16>
    %8 = vector.shape_cast %7 : vector<1x1x16x4xbf16> to vector<16x4xbf16>
    %9 = arith.extf %8 : vector<16x4xbf16> to vector<16x4xf32>
    %10 = arith.addf %6, %9 : vector<16x4xf32>
    %c0_9 = arith.constant 0 : index
    %c3 = arith.constant 3 : index
    %c0_10 = arith.constant 0 : index
    %c0_11 = arith.constant 0 : index
    %11 = vector.load %arg1[%c0_9, %c3, %c0_10, %c0_11] : memref<1x16x16x4xbf16, #tpu.memory_space<vmem>>, vector<1x1x16x4xbf16>
    %12 = vector.shape_cast %11 : vector<1x1x16x4xbf16> to vector<16x4xbf16>
    %13 = arith.extf %12 : vector<16x4xbf16> to vector<16x4xf32>
    %14 = arith.addf %10, %13 : vector<16x4xf32>
    %c0_12 = arith.constant 0 : index
    %c4 = arith.constant 4 : index
    %c0_13 = arith.constant 0 : index
    %c0_14 = arith.constant 0 : index
    %15 = vector.load %arg1[%c0_12, %c4, %c0_13, %c0_14] : memref<1x16x16x4xbf16, #tpu.memory_space<vmem>>, vector<1x1x16x4xbf16>
    %16 = vector.shape_cast %15 : vector<1x1x16x4xbf16> to vector<16x4xbf16>
    %17 = arith.extf %16 : vector<16x4xbf16> to vector<16x4xf32>
    %18 = arith.addf %14, %17 : vector<16x4xf32>
    %c0_15 = arith.constant 0 : index
    %c0_16 = arith.constant 0 : index
    %19 = vector.load %arg2[%c0_15, %c0_16] : memref<6x16xf32, #tpu.memory_space<vmem>>, vector<6x16xf32>
    %cst = arith.constant dense<0.000000e+00> : vector<6x4xf32>
    %20 = tpu.matmul %19, %18, %cst {dimension_numbers = #tpu.dot_dimension_numbers<[1], [0], [0], [1], [0, 0, 1, 1], [], []>} : vector<6x16xf32>, vector<16x4xf32>, vector<6x4xf32> -> vector<6x4xf32>
    %21 = arith.truncf %20 : vector<6x4xf32> to vector<6x4xbf16>
    %c0_17 = arith.constant 0 : index
    %c0_18 = arith.constant 0 : index
    %22 = vector.load %arg3[%c0_17, %c0_18] : memref<4x128xbf16, #tpu.memory_space<vmem>>, vector<4x128xbf16>
    %cst_19 = arith.constant dense<0.000000e+00> : vector<6x128xf32>
    %23 = tpu.matmul %21, %22, %cst_19 {dimension_numbers = #tpu.dot_dimension_numbers<[1], [0], [0], [1], [0, 0, 1, 1], [], []>} : vector<6x4xbf16>, vector<4x128xbf16>, vector<6x128xf32> -> vector<6x128xf32>
    %24 = arith.negf %23 : vector<6x128xf32>
    %25 = math.exp %24 : vector<6x128xf32>
    %cst_20 = arith.constant 1.000000e+00 : f32
    %26 = vector.broadcast %cst_20 : f32 to vector<6x128xf32>
    %27 = arith.addf %26, %25 : vector<6x128xf32>
    %28 = arith.divf %26, %27 : vector<6x128xf32>
    %29 = arith.truncf %28 : vector<6x128xf32> to vector<6x128xbf16>
    %c0_21 = arith.constant 0 : index
    %c0_22 = arith.constant 0 : index
    %c0_23 = arith.constant 0 : index
    %c0_24 = arith.constant 0 : index
    %30 = vector.load %arg4[%c0_21, %c0_22, %c0_23, %c0_24] : memref<1x6x6x128xbf16, #tpu.memory_space<vmem>>, vector<1x1x6x128xbf16>
    %31 = vector.shape_cast %30 : vector<1x1x6x128xbf16> to vector<6x128xbf16>
    %32 = vector.shape_cast %29 : vector<6x128xbf16> to vector<1x1x6x128xbf16>
    tpu.vector_store %arg4[%c0_21, %c0_22, %c0_23, %c0_24], %32 {strides = array<i32>} : memref<1x6x6x128xbf16, #tpu.memory_space<vmem>>, vector<1x1x6x128xbf16>,
    %c0_25 = arith.constant 0 : index
    %c2_26 = arith.constant 2 : index
    %c0_27 = arith.constant 0 : index
    %c0_28 = arith.constant 0 : index
    %33 = vector.load %arg1[%c0_25, %c2_26, %c0_27, %c0_28] : memref<1x16x16x4xbf16, #tpu.memory_space<vmem>>, vector<1x1x16x4xbf16>
    %34 = vector.shape_cast %33 : vector<1x1x16x4xbf16> to vector<16x4xbf16>
    %35 = arith.extf %34 : vector<16x4xbf16> to vector<16x4xf32>
    %c0_29 = arith.constant 0 : index
    %c3_30 = arith.constant 3 : index
    %c0_31 = arith.constant 0 : index
    %c0_32 = arith.constant 0 : index
    %36 = vector.load %arg1[%c0_29, %c3_30, %c0_31, %c0_32] : memref<1x16x16x4xbf16, #tpu.memory_space<vmem>>, vector<1x1x16x4xbf16>
    %37 = vector.shape_cast %36 : vector<1x1x16x4xbf16> to vector<16x4xbf16>
    %38 = arith.extf %37 : vector<16x4xbf16> to vector<16x4xf32>
    %39 = arith.addf %35, %38 : vector<16x4xf32>
    %c0_33 = arith.constant 0 : index
    %c4_34 = arith.constant 4 : index
    %c0_35 = arith.constant 0 : index
    %c0_36 = arith.constant 0 : index
    %40 = vector.load %arg1[%c0_33, %c4_34, %c0_35, %c0_36] : memref<1x16x16x4xbf16, #tpu.memory_space<vmem>>, vector<1x1x16x4xbf16>
    %41 = vector.shape_cast %40 : vector<1x1x16x4xbf16> to vector<16x4xbf16>
    %42 = arith.extf %41 : vector<16x4xbf16> to vector<16x4xf32>
    %43 = arith.addf %39, %42 : vector<16x4xf32>
    %c0_37 = arith.constant 0 : index
    %c5 = arith.constant 5 : index
    %c0_38 = arith.constant 0 : index
    %c0_39 = arith.constant 0 : index
    %44 = vector.load %arg1[%c0_37, %c5, %c0_38, %c0_39] : memref<1x16x16x4xbf16, #tpu.memory_space<vmem>>, vector<1x1x16x4xbf16>
    %45 = vector.shape_cast %44 : vector<1x1x16x4xbf16> to vector<16x4xbf16>
    %46 = arith.extf %45 : vector<16x4xbf16> to vector<16x4xf32>
    %47 = arith.addf %43, %46 : vector<16x4xf32>
    %c0_40 = arith.constant 0 : index
    %c6 = arith.constant 6 : index
    %c0_41 = arith.constant 0 : index
    %c0_42 = arith.constant 0 : index
    %48 = vector.load %arg1[%c0_40, %c6, %c0_41, %c0_42] : memref<1x16x16x4xbf16, #tpu.memory_space<vmem>>, vector<1x1x16x4xbf16>
    %49 = vector.shape_cast %48 : vector<1x1x16x4xbf16> to vector<16x4xbf16>
    %50 = arith.extf %49 : vector<16x4xbf16> to vector<16x4xf32>
    %51 = arith.addf %47, %50 : vector<16x4xf32>
    %c0_43 = arith.constant 0 : index
    %c0_44 = arith.constant 0 : index
    %52 = vector.load %arg2[%c0_43, %c0_44] : memref<6x16xf32, #tpu.memory_space<vmem>>, vector<6x16xf32>
    %cst_45 = arith.constant dense<0.000000e+00> : vector<6x4xf32>
    %53 = tpu.matmul %52, %51, %cst_45 {dimension_numbers = #tpu.dot_dimension_numbers<[1], [0], [0], [1], [0, 0, 1, 1], [], []>} : vector<6x16xf32>, vector<16x4xf32>, vector<6x4xf32> -> vector<6x4xf32>
    %54 = arith.truncf %53 : vector<6x4xf32> to vector<6x4xbf16>
    %c0_46 = arith.constant 0 : index
    %c0_47 = arith.constant 0 : index
    %55 = vector.load %arg3[%c0_46, %c0_47] : memref<4x128xbf16, #tpu.memory_space<vmem>>, vector<4x128xbf16>
    %cst_48 = arith.constant dense<0.000000e+00> : vector<6x128xf32>
    %56 = tpu.matmul %54, %55, %cst_48 {dimension_numbers = #tpu.dot_dimension_numbers<[1], [0], [0], [1], [0, 0, 1, 1], [], []>} : vector<6x4xbf16>, vector<4x128xbf16>, vector<6x128xf32> -> vector<6x128xf32>
    %57 = arith.negf %56 : vector<6x128xf32>
    %58 = math.exp %57 : vector<6x128xf32>
    %cst_49 = arith.constant 1.000000e+00 : f32
    %59 = vector.broadcast %cst_49 : f32 to vector<6x128xf32>
    %60 = arith.addf %59, %58 : vector<6x128xf32>
    %61 = arith.divf %59, %60 : vector<6x128xf32>
    %62 = arith.truncf %61 : vector<6x128xf32> to vector<6x128xbf16>
    %c0_50 = arith.constant 0 : index
    %c1_51 = arith.constant 1 : index
    %c0_52 = arith.constant 0 : index
    %c0_53 = arith.constant 0 : index
    %63 = vector.load %arg4[%c0_50, %c1_51, %c0_52, %c0_53] : memref<1x6x6x128xbf16, #tpu.memory_space<vmem>>, vector<1x1x6x128xbf16>
    %64 = vector.shape_cast %63 : vector<1x1x6x128xbf16> to vector<6x128xbf16>
    %65 = vector.shape_cast %62 : vector<6x128xbf16> to vector<1x1x6x128xbf16>
    tpu.vector_store %arg4[%c0_50, %c1_51, %c0_52, %c0_53], %65 {strides = array<i32>} : memref<1x6x6x128xbf16, #tpu.memory_space<vmem>>, vector<1x1x6x128xbf16>,
    %c0_54 = arith.constant 0 : index
    %c4_55 = arith.constant 4 : index
    %c0_56 = arith.constant 0 : index
    %c0_57 = arith.constant 0 : index
    %66 = vector.load %arg1[%c0_54, %c4_55, %c0_56, %c0_57] : memref<1x16x16x4xbf16, #tpu.memory_space<vmem>>, vector<1x1x16x4xbf16>
    %67 = vector.shape_cast %66 : vector<1x1x16x4xbf16> to vector<16x4xbf16>
    %68 = arith.extf %67 : vector<16x4xbf16> to vector<16x4xf32>
    %c0_58 = arith.constant 0 : index
    %c5_59 = arith.constant 5 : index
    %c0_60 = arith.constant 0 : index
    %c0_61 = arith.constant 0 : index
    %69 = vector.load %arg1[%c0_58, %c5_59, %c0_60, %c0_61] : memref<1x16x16x4xbf16, #tpu.memory_space<vmem>>, vector<1x1x16x4xbf16>
    %70 = vector.shape_cast %69 : vector<1x1x16x4xbf16> to vector<16x4xbf16>
    %71 = arith.extf %70 : vector<16x4xbf16> to vector<16x4xf32>
    %72 = arith.addf %68, %71 : vector<16x4xf32>
    %c0_62 = arith.constant 0 : index
    %c6_63 = arith.constant 6 : index
    %c0_64 = arith.constant 0 : index
    %c0_65 = arith.constant 0 : index
    %73 = vector.load %arg1[%c0_62, %c6_63, %c0_64, %c0_65] : memref<1x16x16x4xbf16, #tpu.memory_space<vmem>>, vector<1x1x16x4xbf16>
    %74 = vector.shape_cast %73 : vector<1x1x16x4xbf16> to vector<16x4xbf16>
    %75 = arith.extf %74 : vector<16x4xbf16> to vector<16x4xf32>
    %76 = arith.addf %72, %75 : vector<16x4xf32>
    %c0_66 = arith.constant 0 : index
    %c7 = arith.constant 7 : index
    %c0_67 = arith.constant 0 : index
    %c0_68 = arith.constant 0 : index
    %77 = vector.load %arg1[%c0_66, %c7, %c0_67, %c0_68] : memref<1x16x16x4xbf16, #tpu.memory_space<vmem>>, vector<1x1x16x4xbf16>
    %78 = vector.shape_cast %77 : vector<1x1x16x4xbf16> to vector<16x4xbf16>
    %79 = arith.extf %78 : vector<16x4xbf16> to vector<16x4xf32>
    %80 = arith.addf %76, %79 : vector<16x4xf32>
    %c0_69 = arith.constant 0 : index
    %c8 = arith.constant 8 : index
    %c0_70 = arith.constant 0 : index
    %c0_71 = arith.constant 0 : index
    %81 = vector.load %arg1[%c0_69, %c8, %c0_70, %c0_71] : memref<1x16x16x4xbf16, #tpu.memory_space<vmem>>, vector<1x1x16x4xbf16>
    %82 = vector.shape_cast %81 : vector<1x1x16x4xbf16> to vector<16x4xbf16>
    %83 = arith.extf %82 : vector<16x4xbf16> to vector<16x4xf32>
    %84 = arith.addf %80, %83 : vector<16x4xf32>
    %c0_72 = arith.constant 0 : index
    %c0_73 = arith.constant 0 : index
    %85 = vector.load %arg2[%c0_72, %c0_73] : memref<6x16xf32, #tpu.memory_space<vmem>>, vector<6x16xf32>
    %cst_74 = arith.constant dense<0.000000e+00> : vector<6x4xf32>
    %86 = tpu.matmul %85, %84, %cst_74 {dimension_numbers = #tpu.dot_dimension_numbers<[1], [0], [0], [1], [0, 0, 1, 1], [], []>} : vector<6x16xf32>, vector<16x4xf32>, vector<6x4xf32> -> vector<6x4xf32>
    %87 = arith.truncf %86 : vector<6x4xf32> to vector<6x4xbf16>
    %c0_75 = arith.constant 0 : index
    %c0_76 = arith.constant 0 : index
    %88 = vector.load %arg3[%c0_75, %c0_76] : memref<4x128xbf16, #tpu.memory_space<vmem>>, vector<4x128xbf16>
    %cst_77 = arith.constant dense<0.000000e+00> : vector<6x128xf32>
    %89 = tpu.matmul %87, %88, %cst_77 {dimension_numbers = #tpu.dot_dimension_numbers<[1], [0], [0], [1], [0, 0, 1, 1], [], []>} : vector<6x4xbf16>, vector<4x128xbf16>, vector<6x128xf32> -> vector<6x128xf32>
    %90 = arith.negf %89 : vector<6x128xf32>
    %91 = math.exp %90 : vector<6x128xf32>
    %cst_78 = arith.constant 1.000000e+00 : f32
    %92 = vector.broadcast %cst_78 : f32 to vector<6x128xf32>
    %93 = arith.addf %92, %91 : vector<6x128xf32>
    %94 = arith.divf %92, %93 : vector<6x128xf32>
    %95 = arith.truncf %94 : vector<6x128xf32> to vector<6x128xbf16>
    %c0_79 = arith.constant 0 : index
    %c2_80 = arith.constant 2 : index
    %c0_81 = arith.constant 0 : index
    %c0_82 = arith.constant 0 : index
    %96 = vector.load %arg4[%c0_79, %c2_80, %c0_81, %c0_82] : memref<1x6x6x128xbf16, #tpu.memory_space<vmem>>, vector<1x1x6x128xbf16>
    %97 = vector.shape_cast %96 : vector<1x1x6x128xbf16> to vector<6x128xbf16>
    %98 = vector.shape_cast %95 : vector<6x128xbf16> to vector<1x1x6x128xbf16>
    tpu.vector_store %arg4[%c0_79, %c2_80, %c0_81, %c0_82], %98 {strides = array<i32>} : memref<1x6x6x128xbf16, #tpu.memory_space<vmem>>, vector<1x1x6x128xbf16>,
    %c0_83 = arith.constant 0 : index
    %c6_84 = arith.constant 6 : index
    %c0_85 = arith.constant 0 : index
    %c0_86 = arith.constant 0 : index
    %99 = vector.load %arg1[%c0_83, %c6_84, %c0_85, %c0_86] : memref<1x16x16x4xbf16, #tpu.memory_space<vmem>>, vector<1x1x16x4xbf16>
    %100 = vector.shape_cast %99 : vector<1x1x16x4xbf16> to vector<16x4xbf16>
    %101 = arith.extf %100 : vector<16x4xbf16> to vector<16x4xf32>
    %c0_87 = arith.constant 0 : index
    %c7_88 = arith.constant 7 : index
    %c0_89 = arith.constant 0 : index
    %c0_90 = arith.constant 0 : index
    %102 = vector.load %arg1[%c0_87, %c7_88, %c0_89, %c0_90] : memref<1x16x16x4xbf16, #tpu.memory_space<vmem>>, vector<1x1x16x4xbf16>
    %103 = vector.shape_cast %102 : vector<1x1x16x4xbf16> to vector<16x4xbf16>
    %104 = arith.extf %103 : vector<16x4xbf16> to vector<16x4xf32>
    %105 = arith.addf %101, %104 : vector<16x4xf32>
    %c0_91 = arith.constant 0 : index
    %c8_92 = arith.constant 8 : index
    %c0_93 = arith.constant 0 : index
    %c0_94 = arith.constant 0 : index
    %106 = vector.load %arg1[%c0_91, %c8_92, %c0_93, %c0_94] : memref<1x16x16x4xbf16, #tpu.memory_space<vmem>>, vector<1x1x16x4xbf16>
    %107 = vector.shape_cast %106 : vector<1x1x16x4xbf16> to vector<16x4xbf16>
    %108 = arith.extf %107 : vector<16x4xbf16> to vector<16x4xf32>
    %109 = arith.addf %105, %108 : vector<16x4xf32>
    %c0_95 = arith.constant 0 : index
    %c9 = arith.constant 9 : index
    %c0_96 = arith.constant 0 : index
    %c0_97 = arith.constant 0 : index
    %110 = vector.load %arg1[%c0_95, %c9, %c0_96, %c0_97] : memref<1x16x16x4xbf16, #tpu.memory_space<vmem>>, vector<1x1x16x4xbf16>
    %111 = vector.shape_cast %110 : vector<1x1x16x4xbf16> to vector<16x4xbf16>
    %112 = arith.extf %111 : vector<16x4xbf16> to vector<16x4xf32>
    %113 = arith.addf %109, %112 : vector<16x4xf32>
    %c0_98 = arith.constant 0 : index
    %c10 = arith.constant 10 : index
    %c0_99 = arith.constant 0 : index
    %c0_100 = arith.constant 0 : index
    %114 = vector.load %arg1[%c0_98, %c10, %c0_99, %c0_100] : memref<1x16x16x4xbf16, #tpu.memory_space<vmem>>, vector<1x1x16x4xbf16>
    %115 = vector.shape_cast %114 : vector<1x1x16x4xbf16> to vector<16x4xbf16>
    %116 = arith.extf %115 : vector<16x4xbf16> to vector<16x4xf32>
    %117 = arith.addf %113, %116 : vector<16x4xf32>
    %c0_101 = arith.constant 0 : index
    %c0_102 = arith.constant 0 : index
    %118 = vector.load %arg2[%c0_101, %c0_102] : memref<6x16xf32, #tpu.memory_space<vmem>>, vector<6x16xf32>
    %cst_103 = arith.constant dense<0.000000e+00> : vector<6x4xf32>
    %119 = tpu.matmul %118, %117, %cst_103 {dimension_numbers = #tpu.dot_dimension_numbers<[1], [0], [0], [1], [0, 0, 1, 1], [], []>} : vector<6x16xf32>, vector<16x4xf32>, vector<6x4xf32> -> vector<6x4xf32>
    %120 = arith.truncf %119 : vector<6x4xf32> to vector<6x4xbf16>
    %c0_104 = arith.constant 0 : index
    %c0_105 = arith.constant 0 : index
    %121 = vector.load %arg3[%c0_104, %c0_105] : memref<4x128xbf16, #tpu.memory_space<vmem>>, vector<4x128xbf16>
    %cst_106 = arith.constant dense<0.000000e+00> : vector<6x128xf32>
    %122 = tpu.matmul %120, %121, %cst_106 {dimension_numbers = #tpu.dot_dimension_numbers<[1], [0], [0], [1], [0, 0, 1, 1], [], []>} : vector<6x4xbf16>, vector<4x128xbf16>, vector<6x128xf32> -> vector<6x128xf32>
    %123 = arith.negf %122 : vector<6x128xf32>
    %124 = math.exp %123 : vector<6x128xf32>
    %cst_107 = arith.constant 1.000000e+00 : f32
    %125 = vector.broadcast %cst_107 : f32 to vector<6x128xf32>
    %126 = arith.addf %125, %124 : vector<6x128xf32>
    %127 = arith.divf %125, %126 : vector<6x128xf32>
    %128 = arith.truncf %127 : vector<6x128xf32> to vector<6x128xbf16>
    %c0_108 = arith.constant 0 : index
    %c3_109 = arith.constant 3 : index
    %c0_110 = arith.constant 0 : index
    %c0_111 = arith.constant 0 : index
    %129 = vector.load %arg4[%c0_108, %c3_109, %c0_110, %c0_111] : memref<1x6x6x128xbf16, #tpu.memory_space<vmem>>, vector<1x1x6x128xbf16>
    %130 = vector.shape_cast %129 : vector<1x1x6x128xbf16> to vector<6x128xbf16>
    %131 = vector.shape_cast %128 : vector<6x128xbf16> to vector<1x1x6x128xbf16>
    tpu.vector_store %arg4[%c0_108, %c3_109, %c0_110, %c0_111], %131 {strides = array<i32>} : memref<1x6x6x128xbf16, #tpu.memory_space<vmem>>, vector<1x1x6x128xbf16>,
    %c0_112 = arith.constant 0 : index
    %c8_113 = arith.constant 8 : index
    %c0_114 = arith.constant 0 : index
    %c0_115 = arith.constant 0 : index
    %132 = vector.load %arg1[%c0_112, %c8_113, %c0_114, %c0_115] : memref<1x16x16x4xbf16, #tpu.memory_space<vmem>>, vector<1x1x16x4xbf16>
    %133 = vector.shape_cast %132 : vector<1x1x16x4xbf16> to vector<16x4xbf16>
    %134 = arith.extf %133 : vector<16x4xbf16> to vector<16x4xf32>
    %c0_116 = arith.constant 0 : index
    %c9_117 = arith.constant 9 : index
    %c0_118 = arith.constant 0 : index
    %c0_119 = arith.constant 0 : index
    %135 = vector.load %arg1[%c0_116, %c9_117, %c0_118, %c0_119] : memref<1x16x16x4xbf16, #tpu.memory_space<vmem>>, vector<1x1x16x4xbf16>
    %136 = vector.shape_cast %135 : vector<1x1x16x4xbf16> to vector<16x4xbf16>
    %137 = arith.extf %136 : vector<16x4xbf16> to vector<16x4xf32>
    %138 = arith.addf %134, %137 : vector<16x4xf32>
    %c0_120 = arith.constant 0 : index
    %c10_121 = arith.constant 10 : index
    %c0_122 = arith.constant 0 : index
    %c0_123 = arith.constant 0 : index
    %139 = vector.load %arg1[%c0_120, %c10_121, %c0_122, %c0_123] : memref<1x16x16x4xbf16, #tpu.memory_space<vmem>>, vector<1x1x16x4xbf16>
    %140 = vector.shape_cast %139 : vector<1x1x16x4xbf16> to vector<16x4xbf16>
    %141 = arith.extf %140 : vector<16x4xbf16> to vector<16x4xf32>
    %142 = arith.addf %138, %141 : vector<16x4xf32>
    %c0_124 = arith.constant 0 : index
    %c11 = arith.constant 11 : index
    %c0_125 = arith.constant 0 : index
    %c0_126 = arith.constant 0 : index
    %143 = vector.load %arg1[%c0_124, %c11, %c0_125, %c0_126] : memref<1x16x16x4xbf16, #tpu.memory_space<vmem>>, vector<1x1x16x4xbf16>
    %144 = vector.shape_cast %143 : vector<1x1x16x4xbf16> to vector<16x4xbf16>
    %145 = arith.extf %144 : vector<16x4xbf16> to vector<16x4xf32>
    %146 = arith.addf %142, %145 : vector<16x4xf32>
    %c0_127 = arith.constant 0 : index
    %c12 = arith.constant 12 : index
    %c0_128 = arith.constant 0 : index
    %c0_129 = arith.constant 0 : index
    %147 = vector.load %arg1[%c0_127, %c12, %c0_128, %c0_129] : memref<1x16x16x4xbf16, #tpu.memory_space<vmem>>, vector<1x1x16x4xbf16>
    %148 = vector.shape_cast %147 : vector<1x1x16x4xbf16> to vector<16x4xbf16>
    %149 = arith.extf %148 : vector<16x4xbf16> to vector<16x4xf32>
    %150 = arith.addf %146, %149 : vector<16x4xf32>
    %c0_130 = arith.constant 0 : index
    %c0_131 = arith.constant 0 : index
    %151 = vector.load %arg2[%c0_130, %c0_131] : memref<6x16xf32, #tpu.memory_space<vmem>>, vector<6x16xf32>
    %cst_132 = arith.constant dense<0.000000e+00> : vector<6x4xf32>
    %152 = tpu.matmul %151, %150, %cst_132 {dimension_numbers = #tpu.dot_dimension_numbers<[1], [0], [0], [1], [0, 0, 1, 1], [], []>} : vector<6x16xf32>, vector<16x4xf32>, vector<6x4xf32> -> vector<6x4xf32>
    %153 = arith.truncf %152 : vector<6x4xf32> to vector<6x4xbf16>
    %c0_133 = arith.constant 0 : index
    %c0_134 = arith.constant 0 : index
    %154 = vector.load %arg3[%c0_133, %c0_134] : memref<4x128xbf16, #tpu.memory_space<vmem>>, vector<4x128xbf16>
    %cst_135 = arith.constant dense<0.000000e+00> : vector<6x128xf32>
    %155 = tpu.matmul %153, %154, %cst_135 {dimension_numbers = #tpu.dot_dimension_numbers<[1], [0], [0], [1], [0, 0, 1, 1], [], []>} : vector<6x4xbf16>, vector<4x128xbf16>, vector<6x128xf32> -> vector<6x128xf32>
    %156 = arith.negf %155 : vector<6x128xf32>
    %157 = math.exp %156 : vector<6x128xf32>
    %cst_136 = arith.constant 1.000000e+00 : f32
    %158 = vector.broadcast %cst_136 : f32 to vector<6x128xf32>
    %159 = arith.addf %158, %157 : vector<6x128xf32>
    %160 = arith.divf %158, %159 : vector<6x128xf32>
    %161 = arith.truncf %160 : vector<6x128xf32> to vector<6x128xbf16>
    %c0_137 = arith.constant 0 : index
    %c4_138 = arith.constant 4 : index
    %c0_139 = arith.constant 0 : index
    %c0_140 = arith.constant 0 : index
    %162 = vector.load %arg4[%c0_137, %c4_138, %c0_139, %c0_140] : memref<1x6x6x128xbf16, #tpu.memory_space<vmem>>, vector<1x1x6x128xbf16>
    %163 = vector.shape_cast %162 : vector<1x1x6x128xbf16> to vector<6x128xbf16>
    %164 = vector.shape_cast %161 : vector<6x128xbf16> to vector<1x1x6x128xbf16>
    tpu.vector_store %arg4[%c0_137, %c4_138, %c0_139, %c0_140], %164 {strides = array<i32>} : memref<1x6x6x128xbf16, #tpu.memory_space<vmem>>, vector<1x1x6x128xbf16>,
    %c0_141 = arith.constant 0 : index
    %c10_142 = arith.constant 10 : index
    %c0_143 = arith.constant 0 : index
    %c0_144 = arith.constant 0 : index
    %165 = vector.load %arg1[%c0_141, %c10_142, %c0_143, %c0_144] : memref<1x16x16x4xbf16, #tpu.memory_space<vmem>>, vector<1x1x16x4xbf16>
    %166 = vector.shape_cast %165 : vector<1x1x16x4xbf16> to vector<16x4xbf16>
    %167 = arith.extf %166 : vector<16x4xbf16> to vector<16x4xf32>
    %c0_145 = arith.constant 0 : index
    %c11_146 = arith.constant 11 : index
    %c0_147 = arith.constant 0 : index
    %c0_148 = arith.constant 0 : index
    %168 = vector.load %arg1[%c0_145, %c11_146, %c0_147, %c0_148] : memref<1x16x16x4xbf16, #tpu.memory_space<vmem>>, vector<1x1x16x4xbf16>
    %169 = vector.shape_cast %168 : vector<1x1x16x4xbf16> to vector<16x4xbf16>
    %170 = arith.extf %169 : vector<16x4xbf16> to vector<16x4xf32>
    %171 = arith.addf %167, %170 : vector<16x4xf32>
    %c0_149 = arith.constant 0 : index
    %c12_150 = arith.constant 12 : index
    %c0_151 = arith.constant 0 : index
    %c0_152 = arith.constant 0 : index
    %172 = vector.load %arg1[%c0_149, %c12_150, %c0_151, %c0_152] : memref<1x16x16x4xbf16, #tpu.memory_space<vmem>>, vector<1x1x16x4xbf16>
    %173 = vector.shape_cast %172 : vector<1x1x16x4xbf16> to vector<16x4xbf16>
    %174 = arith.extf %173 : vector<16x4xbf16> to vector<16x4xf32>
    %175 = arith.addf %171, %174 : vector<16x4xf32>
    %c0_153 = arith.constant 0 : index
    %c13 = arith.constant 13 : index
    %c0_154 = arith.constant 0 : index
    %c0_155 = arith.constant 0 : index
    %176 = vector.load %arg1[%c0_153, %c13, %c0_154, %c0_155] : memref<1x16x16x4xbf16, #tpu.memory_space<vmem>>, vector<1x1x16x4xbf16>
    %177 = vector.shape_cast %176 : vector<1x1x16x4xbf16> to vector<16x4xbf16>
    %178 = arith.extf %177 : vector<16x4xbf16> to vector<16x4xf32>
    %179 = arith.addf %175, %178 : vector<16x4xf32>
    %c0_156 = arith.constant 0 : index
    %c14 = arith.constant 14 : index
    %c0_157 = arith.constant 0 : index
    %c0_158 = arith.constant 0 : index
    %180 = vector.load %arg1[%c0_156, %c14, %c0_157, %c0_158] : memref<1x16x16x4xbf16, #tpu.memory_space<vmem>>, vector<1x1x16x4xbf16>
    %181 = vector.shape_cast %180 : vector<1x1x16x4xbf16> to vector<16x4xbf16>
    %182 = arith.extf %181 : vector<16x4xbf16> to vector<16x4xf32>
    %183 = arith.addf %179, %182 : vector<16x4xf32>
    %c0_159 = arith.constant 0 : index
    %c0_160 = arith.constant 0 : index
    %184 = vector.load %arg2[%c0_159, %c0_160] : memref<6x16xf32, #tpu.memory_space<vmem>>, vector<6x16xf32>
    %cst_161 = arith.constant dense<0.000000e+00> : vector<6x4xf32>
    %185 = tpu.matmul %184, %183, %cst_161 {dimension_numbers = #tpu.dot_dimension_numbers<[1], [0], [0], [1], [0, 0, 1, 1], [], []>} : vector<6x16xf32>, vector<16x4xf32>, vector<6x4xf32> -> vector<6x4xf32>
    %186 = arith.truncf %185 : vector<6x4xf32> to vector<6x4xbf16>
    %c0_162 = arith.constant 0 : index
    %c0_163 = arith.constant 0 : index
    %187 = vector.load %arg3[%c0_162, %c0_163] : memref<4x128xbf16, #tpu.memory_space<vmem>>, vector<4x128xbf16>
    %cst_164 = arith.constant dense<0.000000e+00> : vector<6x128xf32>
    %188 = tpu.matmul %186, %187, %cst_164 {dimension_numbers = #tpu.dot_dimension_numbers<[1], [0], [0], [1], [0, 0, 1, 1], [], []>} : vector<6x4xbf16>, vector<4x128xbf16>, vector<6x128xf32> -> vector<6x128xf32>
    %189 = arith.negf %188 : vector<6x128xf32>
    %190 = math.exp %189 : vector<6x128xf32>
    %cst_165 = arith.constant 1.000000e+00 : f32
    %191 = vector.broadcast %cst_165 : f32 to vector<6x128xf32>
    %192 = arith.addf %191, %190 : vector<6x128xf32>
    %193 = arith.divf %191, %192 : vector<6x128xf32>
    %194 = arith.truncf %193 : vector<6x128xf32> to vector<6x128xbf16>
    %c0_166 = arith.constant 0 : index
    %c5_167 = arith.constant 5 : index
    %c0_168 = arith.constant 0 : index
    %c0_169 = arith.constant 0 : index
    %195 = vector.load %arg4[%c0_166, %c5_167, %c0_168, %c0_169] : memref<1x6x6x128xbf16, #tpu.memory_space<vmem>>, vector<1x1x6x128xbf16>
    %196 = vector.shape_cast %195 : vector<1x1x6x128xbf16> to vector<6x128xbf16>
    %197 = vector.shape_cast %194 : vector<6x128xbf16> to vector<1x1x6x128xbf16>
    tpu.vector_store %arg4[%c0_166, %c5_167, %c0_168, %c0_169], %197 {strides = array<i32>} : memref<1x6x6x128xbf16, #tpu.memory_space<vmem>>, vector<1x1x6x128xbf16>,
    return
  }
  func.func @transform_0(%arg0: i32) -> (i32, i32, i32, i32) {
    %c0_i32 = arith.constant 0 : i32
    %c0_i32_0 = arith.constant 0 : i32
    %c0_i32_1 = arith.constant 0 : i32
    %c0_i32_2 = arith.constant 0 : i32
    return %arg0, %c0_i32, %c0_i32_0, %c0_i32_1 : i32, i32, i32, i32
  }
  func.func @transform_1(%arg0: i32) -> (i32, i32) {
    %c0_i32 = arith.constant 0 : i32
    %c0_i32_0 = arith.constant 0 : i32
    %c0_i32_1 = arith.constant 0 : i32
    return %c0_i32, %c0_i32_0 : i32, i32
  }
  func.func @transform_2(%arg0: i32) -> (i32, i32) {
    %c0_i32 = arith.constant 0 : i32
    %c0_i32_0 = arith.constant 0 : i32
    %c0_i32_1 = arith.constant 0 : i32
    return %c0_i32, %c0_i32_0 : i32, i32
  }
  func.func @transform_3(%arg0: i32) -> (i32, i32, i32, i32) {
    %c0_i32 = arith.constant 0 : i32
    %c0_i32_0 = arith.constant 0 : i32
    %c0_i32_1 = arith.constant 0 : i32
    %c0_i32_2 = arith.constant 0 : i32
    return %arg0, %c0_i32, %c0_i32_0, %c0_i32_1 : i32, i32, i32, i32
  }
}

</mosaic_0001>

<bundles_post_ra>
// kernel: tpu_custom_call.1
= control target key start
LH: loop header
LB: loop body
LE: loop exit
PB: predicated region body
PF: predicated region fallthrough
CT: control target
= control target key end

     0   :  { %s1631_s12 = smov 0   ;;  %s1767_s0 = inlined_call_operand.vmem [shape: bf16[2,16,16,4], index: 0, kind: input, shape index: {}]   ;;  %s1768_s1 = inlined_call_operand.vmem [shape: f32[6,16], index: 1, kind: input, shape index: {}]   ;;  %s1769_s2 = inlined_call_operand.vmem [shape: bf16[4,128], index: 2, kind: input, shape index: {}]   ;;  %s1770_s3 = inlined_call_operand.vmem [shape: bf16[2,6,6,128], index: 3, kind: output, shape index: {}]  }
   0x1 LB: > { %s1197_s13 = sadd.s32 4294967295, %s1606_s12   ;;  %p1201_p0 = scmp.ge.s32.totalorder %s1606_s12, 1  ;;  %s1606_s12 = sphi %s1631_s12, %s13_s12  }
   0x2   : > { %p137_p1 = scmp.lt.s32.totalorder %s1606_s12, 3 }
   0x4   : > { %p138_p2 = pnand %p1201_p0, %p137_p1 }
   0x5   : > { %p161_p3 = scmp.lt.s32.totalorder (!%p138_p2), %s1197_s13, 1  ;;  %v1608_v0 = vmov (!%p138_p2), 0.0|0.0   ;;  %vm1609_vm0 = vmmov (!%p138_p2), 0   ;;  %v1610_v1 = vmov (!%p138_p2), 0.0   ;;  %v280_v40 = vld [vmem:[%s1769_s2] sm:$0x3] (!%p138_p2) }
   0x6   : > { %141 = sbr.rel (%p138_p2) target bundleno = 932 (0x3a4), region = 32  ;;  %1546 = vmatprep.subr.bf16.mxu1 (!%p138_p2), %v1608_v0  ;;  %1549 = vmatprep.subr.bf16.mxu0 (!%p138_p2), %v1608_v0  ;;  %vm285_vm1 = vcmask (!%p138_p2), 1041408   ;;  %v442_v42 = vld [vmem:[%s1769_s2] sm:$0x3] (!%p138_p2)  ;;  %vm205_vm2 = vcmask (!%p138_p2), 130048   ;;  %vm281_vm3 = vcmask (!%p138_p2), 31744  }
   0x7   : > { %1472 = vmatprep.mubr.msk.f32.mxu1 (!%p138_p2), %vm1609_vm0, %v1610_v1  ;;  %1485 = vmatprep.mubr.msk.f32.mxu0 (!%p138_p2), %vm1609_vm0, %v1610_v1  ;;  %v204_v43 = vld [vmem:[%s1768_s1] sm:$0x3f] (!%p138_p2)  ;;  %v287_v45 = vsel (!%p138_p2), %vm285_vm1, %v280_v40, 0  ;;  %v447_v46 = vsel (!%p138_p2), %vm285_vm1, %v442_v42, 0 }
   0x8   : > { %v367_v44 = vld [vmem:[%s1768_s1] sm:$0x3f] (!%p138_p2) }
   0xd   : > { %s1772_s13 = smov (!%p161_p3, %s1197_s13), 1 }
   0xe   : > { %s1288_s14 = sshll.u32 %s1772_s13, 7  ;;  %s1564_s11 = smul.u32 24, %s1772_s13 }
   0xf   : > { %s1651_s17 = scalar_lea.vmem %s1767_s0, %s1288_s14 }
  0x10   : > { %v1290_v2 = vld [vmem:[%s1651_s17] sm:$0xff]   ;;  %v1409_v3 = vld [vmem:[%s1651_s17 + $0x8] sm:$0xff]   ;;  %v1410_v4 = vld [vmem:[%s1651_s17 + $0x10] sm:$0xff]   ;;  %s1746_s16 = scalar_lea.vmem %s1770_s3, %s1564_s11 }
  0x11   : > { %v1291_v5 = vunpack.c.l.bf16 %v1290_v2  ;;  %v1292_v6 = vunpack.c.h.bf16 %v1290_v2  ;;  %v1295_v7 = vunpack.c.l.bf16 %v1409_v3  ;;  %v1296_v8 = vunpack.c.h.bf16 %v1409_v3  ;;  %v1411_v9 = vld [vmem:[%s1651_s17 + $0x18] sm:$0xff]   ;;  %v1412_v10 = vld [vmem:[%s1651_s17 + $0x20] sm:$0xff]   ;;  %v1416_v11 = vld [vmem:[%s1651_s17 + $0x28] sm:$0xff]  }
  0x12   : > { %v1299_v12 = vunpack.c.l.bf16 %v1410_v4  ;;  %v1300_v13 = vunpack.c.h.bf16 %v1410_v4  ;;  %v1303_v14 = vunpack.c.l.bf16 %v1411_v9  ;;  %v1304_v15 = vunpack.c.h.bf16 %v1411_v9  ;;  %v1417_v20 = vld [vmem:[%s1651_s17 + $0x30] sm:$0xff]   ;;  %v1421_v47 = vld [vmem:[%s1651_s17 + $0x38] sm:$0xff]   ;;  %v1422_v50 = vld [vmem:[%s1651_s17 + $0x40] sm:$0xff]  }
  0x13   : > { %v181_v16 = vadd.f32 %v1295_v7, %v1291_v5  ;;  %v182_v17 = vadd.f32 %v1296_v8, %v1292_v6  ;;  %v1307_v18 = vunpack.c.l.bf16 %v1412_v10  ;;  %v1308_v19 = vunpack.c.h.bf16 %v1412_v10  ;;  %v1426_v57 = vld [vmem:[%s1651_s17 + $0x48] sm:$0xff]   ;;  %v1427_v2 = vld [vmem:[%s1651_s17 + $0x50] sm:$0xff]  }
  0x14   : > { %v345_v21 = vadd.f32 %v1303_v14, %v1299_v12  ;;  %v346_v22 = vadd.f32 %v1304_v15, %v1300_v13  ;;  %v1323_v23 = vunpack.c.l.bf16 %v1416_v11  ;;  %v1324_v24 = vunpack.c.h.bf16 %v1416_v11 }
  0x15   : > { %v188_v25 = vadd.f32 %v1299_v12, %v181_v16  ;;  %v189_v26 = vadd.f32 %v1300_v13, %v182_v17  ;;  %v1327_v29 = vunpack.c.l.bf16 %v1417_v20  ;;  %v1328_v30 = vunpack.c.h.bf16 %v1417_v20 }
  0x16   : > { %v351_v27 = vadd.f32 %v1307_v18, %v345_v21  ;;  %v352_v28 = vadd.f32 %v1308_v19, %v346_v22  ;;  %v1343_v48 = vunpack.c.l.bf16 %v1421_v47  ;;  %v1344_v49 = vunpack.c.h.bf16 %v1421_v47  ;;  %v528_v21 = vld [vmem:[%s1768_s1] sm:$0x3f] }
  0x17   : > { %v195_v31 = vadd.f32 %v1303_v14, %v188_v25  ;;  %v196_v32 = vadd.f32 %v1304_v15, %v189_v26  ;;  %v506_v51 = vadd.f32 %v1323_v23, %v1307_v18  ;;  %v507_v52 = vadd.f32 %v1324_v24, %v1308_v19  ;;  %v689_v22 = vld [vmem:[%s1768_s1] sm:$0x3f] }
  0x18   : > { %v358_v33 = vadd.f32 %v1323_v23, %v351_v27  ;;  %v359_v34 = vadd.f32 %v1324_v24, %v352_v28  ;;  %v1347_v53 = vunpack.c.l.bf16 %v1422_v50  ;;  %v1348_v54 = vunpack.c.h.bf16 %v1422_v50  ;;  %v603_v23 = vld [vmem:[%s1769_s2] sm:$0x3]  ;;  %v1431_v27 = vld [vmem:[%s1651_s17 + $0x58] sm:$0xff]  }
  0x19   : > { %v202_v35 = vadd.f32 %v1307_v18, %v195_v31  ;;  %v203_v36 = vadd.f32 %v1308_v19, %v196_v32  ;;  %v667_v55 = vadd.f32 %v1343_v48, %v1327_v29  ;;  %v668_v56 = vadd.f32 %v1344_v49, %v1328_v30  ;;  %v764_v24 = vld [vmem:[%s1769_s2] sm:$0x3] }
  0x1a   : > { %v365_v37 = vadd.f32 %v1327_v29, %v358_v33  ;;  %v366_v38 = vadd.f32 %v1328_v30, %v359_v34  ;;  %v512_v58 = vadd.f32 %v1327_v29, %v506_v51  ;;  %v513_v59 = vadd.f32 %v1328_v30, %v507_v52  ;;  %v1432_v30 = vld [vmem:[%s1651_s17 + $0x60] sm:$0xff]  }
  0x1b   : > { %v1547_v39 = vpack.c.bf16 %v203_v36, %v202_v35  ;;  %v673_v60 = vadd.f32 %v1347_v53, %v667_v55  ;;  %v674_v61 = vadd.f32 %v1348_v54, %v668_v56  ;;  %v1363_v62 = vunpack.c.l.bf16 %v1426_v57 }
  0x1c   : > { %v1550_v41 = vpack.c.bf16 %v366_v38, %v365_v37  ;;  %v1364_v63 = vunpack.c.h.bf16 %v1426_v57  ;;  %v519_v3 = vadd.f32 %v1343_v48, %v512_v58  ;;  %v520_v4 = vadd.f32 %v1344_v49, %v513_v59  ;;  %v1436_v37 = vld [vmem:[%s1651_s17 + $0x68] sm:$0xff]  }
  0x1d   : > { %1548 = vmatpush3.bf16.msra.mxu1 %v1547_v39  ;;  %v680_v5 = vadd.f32 %v1363_v62, %v673_v60  ;;  %v1367_v7 = vunpack.c.l.bf16 %v1427_v2  ;;  %v1368_v8 = vunpack.c.h.bf16 %v1427_v2  ;;  %v608_v25 = vsel %vm285_vm1, %v603_v23, 0 }
  0x1e   : > { %1551 = vmatpush3.bf16.msra.mxu0 %v1550_v41  ;;  %1475 = vmatprep.subr.bf16.mxu1 %v1610_v1  ;;  %v681_v6 = vadd.f32 %v1364_v63, %v674_v61  ;;  %v526_v9 = vadd.f32 %v1347_v53, %v519_v3  ;;  %v527_v10 = vadd.f32 %v1348_v54, %v520_v4  ;;  %v769_v26 = vsel %vm285_vm1, %v764_v24, 0 }
  0x1f   : > { %1488 = vmatprep.subr.bf16.mxu0 %v1610_v1  ;;  %v687_v11 = vadd.f32 %v1367_v7, %v680_v5  ;;  %v1383_v28 = vunpack.c.l.bf16 %v1431_v27  ;;  %v1384_v29 = vunpack.c.h.bf16 %v1431_v27  ;;  %v828_v31 = vadd.f32 %v1363_v62, %v1347_v53 }
  0x20   : > { %1473 = vmatmul.mubr.msk.f32.vlgmr.msra.gmra.mrb[0].mxu1 %vm205_vm2, %v204_v43  ;;  %v688_v12 = vadd.f32 %v1368_v8, %v681_v6  ;;  %v1553_v14 = vpack.c.bf16 %v527_v10, %v526_v9  ;;  %v829_v32 = vadd.f32 %v1364_v63, %v1348_v54  ;;  %v1387_v33 = vunpack.c.l.bf16 %v1432_v30 }
  0x21   : > { %1486 = vmatmul.mubr.msk.f32.vlgmr.msra.gmra.mrb[0].mxu0 %vm205_vm2, %v367_v44  ;;  %1476 = vmatpush3.bf16.msra.mxu1 %v287_v45  ;;  %v1388_v34 = vunpack.c.h.bf16 %v1432_v30  ;;  %v989_v35 = vadd.f32 %v1383_v28, %v1367_v7  ;;  %v990_v36 = vadd.f32 %v1384_v29, %v1368_v8  ;;  %v834_v38 = vadd.f32 %v1367_v7, %v828_v31  ;;  %v1437_v44 = vld [vmem:[%s1651_s17 + $0x70] sm:$0xff]  }
  0x22   : > { %1489 = vmatpush3.bf16.msra.mxu0 %v447_v46  ;;  %1477 = vmatprep.mubr.msk.bf16.mxu1 %vm1609_vm0, %v1610_v1  ;;  %v1556_v18 = vpack.c.bf16 %v688_v12, %v687_v11  ;;  %v835_v39 = vadd.f32 %v1368_v8, %v829_v32  ;;  %v1403_v42 = vunpack.c.l.bf16 %v1436_v37  ;;  %v1404_v43 = vunpack.c.h.bf16 %v1436_v37 }
  0x23   : > { %1490 = vmatprep.mubr.msk.bf16.mxu0 %vm1609_vm0, %v1610_v1  ;;  %1552 = vmatprep.subr.bf16.mxu1 %v1608_v0  ;;  %v995_v40 = vadd.f32 %v1387_v33, %v989_v35  ;;  %v996_v41 = vadd.f32 %v1388_v34, %v990_v36  ;;  %v841_v45 = vadd.f32 %v1383_v28, %v834_v38  ;;  %v1407_v47 = vunpack.c.l.bf16 %v1437_v44 }
  0x24   : > { %1555 = vmatprep.subr.bf16.mxu0 %v1608_v0  ;;  %v842_v46 = vadd.f32 %v1384_v29, %v835_v39  ;;  %v1408_v53 = vunpack.c.h.bf16 %v1437_v44 }
  0x25   : > { %v1002_v51 = vadd.f32 %v1403_v42, %v995_v40  ;;  %v1003_v52 = vadd.f32 %v1404_v43, %v996_v41  ;;  %v848_v60 = vadd.f32 %v1387_v33, %v841_v45 }
  0x26   : > { %v849_v61 = vadd.f32 %v1388_v34, %v842_v46 }
  0x27   : > { %v1009_v62 = vadd.f32 %v1407_v47, %v1002_v51  ;;  %v1010_v63 = vadd.f32 %v1408_v53, %v1003_v52 }
  0x28   : > { %v1559_v3 = vpack.c.bf16 %v849_v61, %v848_v60 }
  0x29   : > { %v1562_v7 = vpack.c.bf16 %v1010_v63, %v1009_v62 }
  0xf3   : > { %v275_v13 = vpop.f32.mrb[0].mxu1 }
  0xf4   : > { %v279_v15 = vpack.c.bf16 %v275_v13, %v275_v13  ;;  %v437_v16 = vpop.f32.mrb[0].mxu0  ;;  %v1474_v17 = vpop.f32.mrb[1].mxu1 }
  0xf5   : > { %v441_v19 = vpack.c.bf16 %v437_v16, %v437_v16  ;;  %v1487_v20 = vpop.f32.mrb[1].mxu0 }
  0xf6   : > { %1478 = vmatmul.mubr.msk.bf16.vlgmr.msra.gmra.mrb[4].mxu1 %vm281_vm3, %v279_v15  ;;  %v1011_v15 = vld [vmem:[%s1768_s1] sm:$0x3f] }
  0xf7   : > { %1491 = vmatmul.mubr.msk.bf16.vlgmr.msra.gmra.mrb[4].mxu0 %vm281_vm3, %v441_v19  ;;  %1554 = vmatpush3.bf16.msra.mxu1 %v1553_v14  ;;  %v850_v14 = vld [vmem:[%s1768_s1] sm:$0x3f] }
  0xf8   : > { %1557 = vmatpush3.bf16.msra.mxu0 %v1556_v18  ;;  %1498 = vmatprep.mubr.msk.f32.mxu1 %vm1609_vm0, %v1610_v1  ;;  %v925_v20 = vld [vmem:[%s1769_s2] sm:$0x3] }
  0xf9   : > { %1511 = vmatprep.mubr.msk.f32.mxu0 %vm1609_vm0, %v1610_v1  ;;  %1501 = vmatprep.subr.bf16.mxu1 %v1610_v1 }
  0xfa   : > { %1514 = vmatprep.subr.bf16.mxu0 %v1610_v1 }
  0xfe   : > { %1499 = vmatmul.mubr.msk.f32.vlgmr.msra.gmra.mrb[2].mxu1 %vm205_vm2, %v528_v21  ;;  %v930_v21 = vsel %vm285_vm1, %v925_v20, 0 }
  0xff   : > { %1512 = vmatmul.mubr.msk.f32.vlgmr.msra.gmra.mrb[2].mxu0 %vm205_vm2, %v689_v22  ;;  %1503 = vmatprep.mubr.msk.bf16.mxu1 %vm1609_vm0, %v1610_v1 }
 0x100   : > { %1516 = vmatprep.mubr.msk.bf16.mxu0 %vm1609_vm0, %v1610_v1  ;;  %1502 = vmatpush3.bf16.msra.mxu1 %v608_v25 }
 0x101   : > { %1515 = vmatpush3.bf16.msra.mxu0 %v769_v26  ;;  %1558 = vmatprep.subr.bf16.mxu1 %v1608_v0 }
 0x102   : > { %1561 = vmatprep.subr.bf16.mxu0 %v1608_v0 }
 0x1c9   : > { %v323_v0 = vpop.f32.mrb[4].mxu1 }
 0x1ca   : > { %v1215_v48 = vmul.f32 -1.442695, %v323_v0  ;;  %v483_v49 = vpop.f32.mrb[4].mxu0  ;;  %v1479_v50 = vpop.f32.mrb[5].mxu1 }
 0x1cb   : > { %v1228_v54 = vmul.f32 -1.442695, %v483_v49  ;;  %v1492_v55 = vpop.f32.mrb[5].mxu0  ;;  %v326_v56 = vpop.f32.mrb[6].mxu1 }
 0x1cc   : > { %1576 = vpow2.f32 %v1215_v48  ;;  %v486_v57 = vpop.f32.mrb[6].mxu0  ;;  %v1480_v58 = vpop.f32.mrb[7].mxu1 }
 0x1cd   : > { %1578 = vpow2.f32 %v1228_v54  ;;  %v1493_v59 = vpop.f32.mrb[7].mxu0 }
 0x1d1   : > { %v598_v2 = vpop.f32.mrb[2].mxu1 }
 0x1d2   : > { %v602_v4 = vpack.c.bf16 %v598_v2, %v598_v2  ;;  %v759_v5 = vpop.f32.mrb[2].mxu0  ;;  %v1500_v6 = vpop.f32.mrb[3].mxu1 }
 0x1d3   : > { %v763_v8 = vpack.c.bf16 %v759_v5, %v759_v5  ;;  %v1513_v9 = vpop.f32.mrb[3].mxu0 }
 0x1d4   : > { %1504 = vmatmul.mubr.msk.bf16.vlgmr.msra.gmra.mrb[8].mxu1 %vm281_vm3, %v602_v4 }
 0x1d5   : > { %1517 = vmatmul.mubr.msk.bf16.vlgmr.msra.gmra.mrb[8].mxu0 %vm281_vm3, %v763_v8  ;;  %1560 = vmatpush3.bf16.msra.mxu1 %v1559_v3 }
 0x1d6   : > { %v1577_v10 = vpop.eup %1576  ;;  %1563 = vmatpush3.bf16.msra.mxu0 %v1562_v7  ;;  %1524 = vmatprep.mubr.msk.f32.mxu1 %vm1609_vm0, %v1610_v1 }
 0x1d7   : > { %v1579_v11 = vpop.eup %1578  ;;  %v332_v12 = vadd.f32 1.0, %v1577_v10  ;;  %1537 = vmatprep.mubr.msk.f32.mxu0 %vm1609_vm0, %v1610_v1  ;;  %1527 = vmatprep.subr.bf16.mxu1 %v1610_v1 }
 0x1d8   : > { %v492_v13 = vadd.f32 1.0, %v1579_v11  ;;  %1540 = vmatprep.subr.bf16.mxu0 %v1610_v1 }
 0x1d9   : > { %1580 = vrcp.f32 %v332_v12 }
 0x1da   : > { %1582 = vrcp.f32 %v492_v13 }
 0x1dc   : > { %1525 = vmatmul.mubr.msk.f32.vlgmr.msra.gmra.mrb[12].mxu1 %vm205_vm2, %v850_v14 }
 0x1dd   : > { %1538 = vmatmul.mubr.msk.f32.vlgmr.msra.gmra.mrb[12].mxu0 %vm205_vm2, %v1011_v15  ;;  %1529 = vmatprep.mubr.msk.bf16.mxu1 %vm1609_vm0, %v1610_v1 }
 0x1de   : > { %1542 = vmatprep.mubr.msk.bf16.mxu0 %vm1609_vm0, %v1610_v1  ;;  %v1086_v1 = vld [vmem:[%s1769_s2] sm:$0x3]  ;;  %1528 = vmatpush3.bf16.msra.mxu1 %v930_v21 }
 0x1df   : > { %v1091_v22 = vsel %vm285_vm1, %v1086_v1, 0 }
 0x1e0   : > { %1541 = vmatpush3.bf16.msra.mxu0 %v1091_v22 }
 0x1e3   : > { %v1581_v16 = vpop.eup %1580 }
 0x1e4   : > { %v1583_v17 = vpop.eup %1582  ;;  %v335_v18 = vpack.c.bf16 %v1581_v16, %v1581_v16 }
 0x1e5   : > { %v495_v19 = vpack.c.bf16 %v1583_v17, %v1583_v17 }
 0x1e6   : > { %336 = vst [vmem:[%s1746_s16] sm:$0x7] %v335_v18 }
 0x1e7   : > { %1229 = vst [vmem:[%s1746_s16 + $0x4] sm:$0x7] %v495_v19 }
 0x2a7   : > { %v644_v23 = vpop.f32.mrb[8].mxu1 }
 0x2a8   : > { %v1242_v24 = vmul.f32 -1.442695, %v644_v23  ;;  %v805_v25 = vpop.f32.mrb[8].mxu0  ;;  %v1505_v26 = vpop.f32.mrb[9].mxu1 }
 0x2a9   : > { %v1256_v27 = vmul.f32 -1.442695, %v805_v25  ;;  %v1518_v28 = vpop.f32.mrb[9].mxu0  ;;  %v647_v29 = vpop.f32.mrb[10].mxu1 }
 0x2aa   : > { %1584 = vpow2.f32 %v1242_v24  ;;  %v808_v30 = vpop.f32.mrb[10].mxu0  ;;  %v1506_v31 = vpop.f32.mrb[11].mxu1 }
 0x2ab   : > { %1586 = vpow2.f32 %v1256_v27  ;;  %v1519_v32 = vpop.f32.mrb[11].mxu0 }
 0x2af   : > { %v920_v33 = vpop.f32.mrb[12].mxu1 }
 0x2b0   : > { %v924_v34 = vpack.c.bf16 %v920_v33, %v920_v33  ;;  %v1081_v35 = vpop.f32.mrb[12].mxu0  ;;  %v1526_v36 = vpop.f32.mrb[13].mxu1 }
 0x2b1   : > { %v1085_v37 = vpack.c.bf16 %v1081_v35, %v1081_v35  ;;  %v1539_v38 = vpop.f32.mrb[13].mxu0 }
 0x2b2   : > { %1530 = vmatmul.mubr.msk.bf16.vlgmr.msra.gmra.mrb[16].mxu1 %vm281_vm3, %v924_v34 }
 0x2b3   : > { %1543 = vmatmul.mubr.msk.bf16.vlgmr.msra.gmra.mrb[16].mxu0 %vm281_vm3, %v1085_v37 }
 0x2b4   : > { %v1585_v39 = vpop.eup %1584 }
 0x2b5   : > { %v1587_v40 = vpop.eup %1586  ;;  %v653_v41 = vadd.f32 1.0, %v1585_v39 }
 0x2b6   : > { %v814_v42 = vadd.f32 1.0, %v1587_v40 }
 0x2b7   : > { %1588 = vrcp.f32 %v653_v41 }
 0x2b8   : > { %1590 = vrcp.f32 %v814_v42 }
 0x2c1   : > { %v1589_v43 = vpop.eup %1588 }
 0x2c2   : > { %v1591_v44 = vpop.eup %1590  ;;  %v656_v0 = vpack.c.bf16 %v1589_v43, %v1589_v43 }
 0x2c3   : > { %v817_v45 = vpack.c.bf16 %v1591_v44, %v1591_v44 }
 0x2c4   : > { %1243 = vst [vmem:[%s1746_s16 + $0x8] sm:$0x7] %v656_v0 }
 0x2c5   : > { %1257 = vst [vmem:[%s1746_s16 + $0xc] sm:$0x7] %v817_v45 }
 0x385   : > { %v966_v46 = vpop.f32.mrb[16].mxu1 }
 0x386   : > { %v1270_v47 = vmul.f32 -1.442695, %v966_v46  ;;  %v1127_v48 = vpop.f32.mrb[16].mxu0  ;;  %v1531_v49 = vpop.f32.mrb[17].mxu1 }
 0x387   : > { %v1284_v50 = vmul.f32 -1.442695, %v1127_v48  ;;  %v1544_v51 = vpop.f32.mrb[17].mxu0  ;;  %v969_v52 = vpop.f32.mrb[18].mxu1 }
 0x388   : > { %1592 = vpow2.f32 %v1270_v47  ;;  %v1130_v53 = vpop.f32.mrb[18].mxu0  ;;  %v1532_v54 = vpop.f32.mrb[19].mxu1 }
 0x389   : > { %1594 = vpow2.f32 %v1284_v50  ;;  %v1545_v55 = vpop.f32.mrb[19].mxu0 }
 0x392   : > { %v1593_v56 = vpop.eup %1592 }
 0x393   : > { %v1595_v57 = vpop.eup %1594  ;;  %v975_v58 = vadd.f32 1.0, %v1593_v56 }
 0x394   : > { %v1136_v59 = vadd.f32 1.0, %v1595_v57 }
 0x395   : > { %1596 = vrcp.f32 %v975_v58 }
 0x396   : > { %1598 = vrcp.f32 %v1136_v59 }
 0x39f   : > { %v1597_v60 = vpop.eup %1596 }
 0x3a0   : > { %v1599_v61 = vpop.eup %1598  ;;  %v978_v62 = vpack.c.bf16 %v1597_v60, %v1597_v60 }
 0x3a1   : > { %v1139_v63 = vpack.c.bf16 %v1599_v61, %v1599_v61 }
 0x3a2   : > { %1271 = vst [vmem:[%s1746_s16 + $0x10] sm:$0x7] %v978_v62 }
 0x3a3   : > { %1285 = vst [vmem:[%s1746_s16 + $0x14] sm:$0x7] %v1139_v63 }
 0x3a4 PF: > { %s13_s12 = sadd.s32 1, %s1606_s12  }
 0x3a5   : > { %p10_p4 = scmp.ge.s32.totalorder %s13_s12, 4  }
 0x3a7   :  { %12 = sbr.rel (!%p10_p4) target bundleno = 1 (0x1), region = 81 }

</bundles_post_ra>
